<compile_context>
chip_gen: v6e
topology: v6e:2x2x1
jax: 0.10.0
libtpu: 0.0.40
codegen_flags: <defaults>
</compile_context>

<pallas_src>
import functools

import jax
import jax.numpy as jnp
import numpy as np
from jax.experimental import pallas as pl
from jax.experimental.pallas import tpu as pltpu


def _round_up(x, m):
    return ((x + m - 1) // m) * m


# --------------------------------------------------------------------------
# Kernels
# --------------------------------------------------------------------------
def _bigram_logits_kernel(idx_ref, emb_ref, logits_ref):
    """Inference path: embedding lookup only.

    idx_ref:    (TILE_N, 1)  int32
    emb_ref:    (Vp, Vp)     f32/bf16  (padded table, pinned across the grid)
    logits_ref: (TILE_N, Vp) f32/bf16
    """
    idx = idx_ref[...]                                        # (TILE_N, 1)
    emb = emb_ref[...]                                        # (Vp, Vp)
    tile_n = idx.shape[0]
    vp = emb.shape[0]

    col = jax.lax.broadcasted_iota(jnp.int32, (tile_n, vp), 1)
    onehot = (col == idx).astype(emb.dtype)                   # (TILE_N, Vp)
    logits = jnp.dot(onehot, emb, preferred_element_type=jnp.float32)
    logits_ref[...] = logits.astype(logits_ref.dtype)         # lane-dense store


def _bigram_train_kernel(it_ref, emb_ref, logits_ref, loss_ref,
                         *, n_valid, mask_rows):
    """Training path: embedding lookup + per-tile cross-entropy partial sum.

    it_ref:     (TILE_N, 2) int32   -- column 0 = index, column 1 = target
    emb_ref:    (Vp, Vp)    f32/bf16 (padded vocab columns pre-biased to -1e30)
    logits_ref: (TILE_N, Vp) f32/bf16
    loss_ref:   (1, 1, 1)    f32    (sum of per-row NLL over valid rows)
    """
    it = it_ref[...]                                          # (TILE_N, 2)
    idx = it[:, 0:1]                                          # (TILE_N, 1)
    tgt = it[:, 1:2]                                          # (TILE_N, 1)
    emb = emb_ref[...]                                        # (Vp, Vp)
    tile_n = it.shape[0]
    vp = emb.shape[0]

    # --- embedding lookup as one-hot matmul (MXU) ---
    col = jax.lax.broadcasted_iota(jnp.int32, (tile_n, vp), 1)
    onehot = (col == idx).astype(emb.dtype)                   # (TILE_N, Vp)
    logits = jnp.dot(onehot, emb, preferred_element_type=jnp.float32)
    logits_ref[...] = logits.astype(logits_ref.dtype)         # lane-dense store

    # --- cross entropy; padded lanes already hold -1e30 (exp underflows to 0),
    #     so no per-lane mask is needed here ---
    m = jnp.max(logits, axis=-1, keepdims=True)               # (TILE_N, 1)
    lse = m + jnp.log(jnp.sum(jnp.exp(logits - m), axis=-1, keepdims=True))
    tgt_logit = jnp.sum(jnp.where(col == tgt, logits, jnp.float32(0.0)),
                        axis=-1, keepdims=True)               # (TILE_N, 1)
    nll = lse - tgt_logit                                     # (TILE_N, 1)

    if mask_rows:
        # Only compiled in when N % tile_n != 0 (pure N-padding rows exist).
        row = (pl.program_id(0) * tile_n
               + jax.lax.broadcasted_iota(jnp.int32, (tile_n, 1), 0))
        nll = jnp.where(row < n_valid, nll, jnp.float32(0.0))

    loss_ref[...] = jnp.sum(nll).reshape(1, 1, 1)


# --------------------------------------------------------------------------
# Wrapper (mirrors BigramLangModel.forward)
# --------------------------------------------------------------------------
def bigram_forward(index, emb_table, targets=None, *, tile_n=4096,
                   logits_dtype=jnp.float32, return_padded_logits=False):
    """index: (B, T) int, emb_table: (V, V), targets: (B, T) int or None.

    Default (exact PyTorch semantics):
      targets given: logits (B*T, V), loss scalar f32
      targets None:  logits (B, T, V), loss None

    return_padded_logits=True (fast path, avoids a full extra HBM copy):
      logits is the raw kernel output of shape (Np, Vp) with Np = ceil(B*T /
      tile) * tile and Vp = 128-padded vocab; the valid region is [:B*T, :V],
      padded vocab lanes hold ~-1e30 (safe for softmax/argmax), padded rows are
      junk. Loss (if any) is unchanged.
    """
    B, T = index.shape
    V = emb_table.shape[0]
    N = B * T

    Vp = _round_up(V, 128)                      # lane-dense vocab

    # Tile sizing: as large as requested to amortize per-grid-step overhead,
    # but always leave >= 2 tiles (when N allows) so the "parallel" grid axis
    # keeps both v7x TensorCores busy.
    n_ceil8 = _round_up(max(N, 1), 8)
    cap = _round_up((n_ceil8 + 1) // 2, 8) if n_ceil8 >= 16 else n_ceil8
    tile_n = _round_up(max(8, min(tile_n, cap)), 8)
    Np = _round_up(N, tile_n)
    num_tiles = Np // tile_n

    # Padded table: fill with -1e30 (NOT -inf: 0 * -inf = NaN in the MXU
    # accumulate), then write the real table into [:V, :V]. A bf16 table is
    # kept bf16 (native-rate MXU on v5e); otherwise compute in f32.
    table_dtype = jnp.bfloat16 if emb_table.dtype == jnp.bfloat16 else jnp.float32
    emb_p = jnp.full((Vp, Vp), -1e30, table_dtype).at[:V, :V].set(
        emb_table.astype(table_dtype))

    idx_flat = index.reshape(N).astype(jnp.int32)

    compiler_params = pltpu.CompilerParams(
        dimension_semantics=("parallel",),
        vmem_limit_bytes=32 * 1024 * 1024,
    )

    if targets is None:
        idx_p = jnp.zeros((Np, 1), jnp.int32).at[:N, 0].set(idx_flat)
        logits_p = pl.pallas_call(
            _bigram_logits_kernel,
            out_shape=jax.ShapeDtypeStruct((Np, Vp), logits_dtype),
            grid=(num_tiles,),
            in_specs=[
                pl.BlockSpec((tile_n, 1), lambda i: (i, 0)),     # indices
                pl.BlockSpec((Vp, Vp), lambda i: (0, 0)),        # table (pinned)
            ],
            out_specs=pl.BlockSpec((tile_n, Vp), lambda i: (i, 0)),
            compiler_params=compiler_params,
        )(idx_p, emb_p)
        if return_padded_logits:
            return logits_p, None
        # NOTE: this slice+reshape is a full extra HBM copy of the logits; use
        # return_padded_logits=True (or fuse the consumer) on hot paths.
        return logits_p[:N, :V].reshape(B, T, V), None

    # Train path: pack idx and targets into one (Np, 2) array -> one DMA and
    # half the lane-padded index VMEM vs two separate (Np, 1) inputs.
    tgt_flat = targets.reshape(N).astype(jnp.int32)
    it = (jnp.zeros((Np, 2), jnp.int32)
          .at[:N, 0].set(idx_flat)
          .at[:N, 1].set(tgt_flat))

    kernel = functools.partial(_bigram_train_kernel,
                               n_valid=N, mask_rows=(Np != N))
    logits_p, partial_loss = pl.pallas_call(
        kernel,
        out_shape=(
            jax.ShapeDtypeStruct((Np, Vp), logits_dtype),
            jax.ShapeDtypeStruct((num_tiles, 1, 1), jnp.float32),
        ),
        grid=(num_tiles,),
        in_specs=[
            pl.BlockSpec((tile_n, 2), lambda i: (i, 0)),         # idx+targets
            pl.BlockSpec((Vp, Vp), lambda i: (0, 0)),            # table (pinned)
        ],
        out_specs=(
            pl.BlockSpec((tile_n, Vp), lambda i: (i, 0)),        # logits
            pl.BlockSpec((1, 1, 1), lambda i: (i, 0, 0)),        # per-tile loss
        ),
        compiler_params=compiler_params,
    )(it, emb_p)

    loss = jnp.sum(partial_loss) * jnp.float32(1.0 / N)
    if return_padded_logits:
        return logits_p, loss
    # NOTE: full extra HBM copy — see comment above.
    logits = logits_p[:N, :V]
    return logits, loss


# --------------------------------------------------------------------------
# Self-test
# --------------------------------------------------------------------------
if __name__ == "__main__":
    vocab_size = 65          # e.g. len(sorted(set(tiny_shakespeare_text)))

    def ref_forward(index, emb_table, targets=None):
        logits = emb_table[index]                              # (B, T, V)
        if targets is None:
            return logits, None
        b, t, v = logits.shape
        l2 = logits.reshape(b * t, v)
        t2 = targets.reshape(b * t)
        lse = jax.scipy.special.logsumexp(l2, axis=-1)
        loss = jnp.mean(lse - l2[jnp.arange(b * t), t2])
        return l2, loss

    key = jax.random.PRNGKey(0)
    k_emb, k_idx, k_tgt = jax.random.split(key, 3)

    # nn.Embedding default init: N(0, 1)
    emb_table = jax.random.normal(k_emb, (vocab_size, vocab_size), jnp.float32)

    # (2, 8): base case; (3, 5): N not a multiple of 8 (row-mask path);
    # (4, 64): multi-vreg tiles.
    for (B, T) in [(2, 8), (3, 5), (4, 64)]:
        k_i = jax.random.fold_in(k_idx, B * 1000 + T)
        k_t = jax.random.fold_in(k_tgt, B * 1000 + T)
        index = jax.random.randint(k_i, (B, T), 0, vocab_size, dtype=jnp.int32)
        targets = jax.random.randint(k_t, (B, T), 0, vocab_size, dtype=jnp.int32)

        logits, loss = bigram_forward(index, emb_table, targets)
        logits, loss = jax.block_until_ready((logits, loss))
        ref_logits, ref_loss = ref_forward(index, emb_table, targets)

        assert logits.shape == (B * T, vocab_size)
        np.testing.assert_allclose(np.asarray(logits), np.asarray(ref_logits),
                                   rtol=1e-5, atol=1e-5)
        np.testing.assert_allclose(float(loss), float(ref_loss),
                                   rtol=1e-5, atol=1e-5)

        # targets=None (inference) path: (B, T, V), loss None
        logits_nt, loss_nt = bigram_forward(index, emb_table, None)
        logits_nt = jax.block_until_ready(logits_nt)
        assert logits_nt.shape == (B, T, vocab_size) and loss_nt is None
        np.testing.assert_allclose(
            np.asarray(logits_nt.reshape(B * T, vocab_size)),
            np.asarray(ref_logits), rtol=1e-5, atol=1e-5)

    # padded fast path (no post-kernel slice copy): valid region is [:N, :V]
    B, T = 2, 8
    index = jax.random.randint(k_idx, (B, T), 0, vocab_size, dtype=jnp.int32)
    targets = jax.random.randint(k_tgt, (B, T), 0, vocab_size, dtype=jnp.int32)
    lp, lo = bigram_forward(index, emb_table, targets, return_padded_logits=True)
    lp, lo = jax.block_until_ready((lp, lo))
    ref_logits, ref_loss = ref_forward(index, emb_table, targets)
    np.testing.assert_allclose(np.asarray(lp[:B * T, :vocab_size]),
                               np.asarray(ref_logits), rtol=1e-5, atol=1e-5)
    np.testing.assert_allclose(float(lo), float(ref_loss), rtol=1e-5, atol=1e-5)

    # TODO(synk): generate() (autoregressive multinomial sampling loop) is a
    # host-side loop around forward(); not implemented as a kernel.
    print("KERNEL_OK")
</pallas_src>

<mosaic_0001>
module attributes {stable_mosaic.version = 11 : i64} {
  func.func @_bigram_train_kernel(%arg0: i32, %arg1: memref<8x2xi32, #tpu.memory_space<vmem>>, %arg2: memref<128x128xf32, #tpu.memory_space<vmem>>, %arg3: memref<8x128xf32, #tpu.memory_space<vmem>>, %arg4: memref<1x1x1xf32, #tpu.memory_space<vmem>>) attributes {dimension_semantics = [#tpu.dimension_semantics<parallel>], iteration_bounds = array<i64: 2>, scalar_prefetch = 0 : i64, scratch_operands = 0 : i64, tpu.core_type = #tpu.core_type<tc>, window_params = [{transform_indices = @transform_0, window_bounds = array<i64: 8, 2>}, {pipeline_mode = #tpu.pipeline_mode<synchronous>, transform_indices = @transform_1, window_bounds = array<i64: 128, 128>}, {transform_indices = @transform_2, window_bounds = array<i64: 8, 128>}, {transform_indices = @transform_3, window_bounds = array<i64: 1, 1, 1>}]} {
    %c0 = arith.constant 0 : index
    %c0_0 = arith.constant 0 : index
    %0 = vector.load %arg1[%c0, %c0_0] : memref<8x2xi32, #tpu.memory_space<vmem>>, vector<8x2xi32>
    %1 = vector.extract_strided_slice %0 {offsets = [0, 0], sizes = [8, 1], strides = [1, 1]} : vector<8x2xi32> to vector<8x1xi32>
    %2 = vector.extract_strided_slice %0 {offsets = [0, 1], sizes = [8, 1], strides = [1, 1]} : vector<8x2xi32> to vector<8x1xi32>
    %c0_1 = arith.constant 0 : index
    %c0_2 = arith.constant 0 : index
    %3 = vector.load %arg2[%c0_1, %c0_2] : memref<128x128xf32, #tpu.memory_space<vmem>>, vector<128x128xf32>
    %4 = tpu.iota {dimensions = array<i32: 1>} : vector<8x128xi32>
    %5 = vector.broadcast %1 : vector<8x1xi32> to vector<8x128xi32>
    %6 = arith.cmpi eq, %4, %5 : vector<8x128xi32>
    %7 = arith.extui %6 : vector<8x128xi1> to vector<8x128xi32>
    %8 = arith.sitofp %7 : vector<8x128xi32> to vector<8x128xf32>
    %cst = arith.constant dense<0.000000e+00> : vector<8x128xf32>
    %9 = tpu.matmul %8, %3, %cst {dimension_numbers = #tpu.dot_dimension_numbers<[1], [0], [0], [1], [0, 0, 1, 1], [], []>} : vector<8x128xf32>, vector<128x128xf32>, vector<8x128xf32> -> vector<8x128xf32>
    %c0_3 = arith.constant 0 : index
    %c0_4 = arith.constant 0 : index
    %10 = vector.load %arg3[%c0_3, %c0_4] : memref<8x128xf32, #tpu.memory_space<vmem>>, vector<8x128xf32>
    tpu.vector_store %arg3[%c0_3, %c0_4], %9 {strides = array<i32>} : memref<8x128xf32, #tpu.memory_space<vmem>>, vector<8x128xf32>,
    %cst_5 = arith.constant dense<0xFF800000> : vector<8xf32>
    %11 = vector.multi_reduction <maximumf>, %9, %cst_5 [1] : vector<8x128xf32> to vector<8xf32>
    %12 = vector.shape_cast %11 : vector<8xf32> to vector<8x1xf32>
    %13 = vector.broadcast %12 : vector<8x1xf32> to vector<8x128xf32>
    %14 = arith.subf %9, %13 : vector<8x128xf32>
    %15 = math.exp %14 : vector<8x128xf32>
    %cst_6 = arith.constant dense<0.000000e+00> : vector<8xf32>
    %16 = vector.multi_reduction <add>, %15, %cst_6 [1] : vector<8x128xf32> to vector<8xf32>
    %17 = vector.shape_cast %16 : vector<8xf32> to vector<8x1xf32>
    %18 = math.log %17 : vector<8x1xf32>
    %19 = arith.addf %12, %18 : vector<8x1xf32>
    %20 = vector.broadcast %2 : vector<8x1xi32> to vector<8x128xi32>
    %21 = arith.cmpi eq, %4, %20 : vector<8x128xi32>
    %cst_7 = arith.constant 0.000000e+00 : f32
    %22 = vector.broadcast %cst_7 : f32 to vector<8x128xf32>
    %23 = arith.select %21, %9, %22 : vector<8x128xi1>, vector<8x128xf32>
    %cst_8 = arith.constant dense<0.000000e+00> : vector<8xf32>
    %24 = vector.multi_reduction <add>, %23, %cst_8 [1] : vector<8x128xf32> to vector<8xf32>
    %25 = vector.shape_cast %24 : vector<8xf32> to vector<8x1xf32>
    %26 = arith.subf %19, %25 : vector<8x1xf32>
    %27 = vector.shape_cast %26 : vector<8x1xf32> to vector<1x8x1xf32>
    %cst_9 = arith.constant dense<0.000000e+00> : vector<1xf32>
    %28 = vector.multi_reduction <add>, %27, %cst_9 [1, 2] : vector<1x8x1xf32> to vector<1xf32>
    %29 = vector.shape_cast %28 : vector<1xf32> to vector<1x1x1xf32>
    %30 = vector.extract %29[0, 0, 0] : f32 from vector<1x1x1xf32>
    %31 = vector.broadcast %30 : f32 to vector<1x1x1xf32>
    %c0_10 = arith.constant 0 : index
    %c0_11 = arith.constant 0 : index
    %c0_12 = arith.constant 0 : index
    %32 = vector.load %arg4[%c0_10, %c0_11, %c0_12] : memref<1x1x1xf32, #tpu.memory_space<vmem>>, vector<1x1x1xf32>
    tpu.vector_store %arg4[%c0_10, %c0_11, %c0_12], %31 {strides = array<i32>} : memref<1x1x1xf32, #tpu.memory_space<vmem>>, vector<1x1x1xf32>,
    return
  }
  func.func @transform_0(%arg0: i32) -> (i32, i32) {
    %c0_i32 = arith.constant 0 : i32
    %c0_i32_0 = arith.constant 0 : i32
    return %arg0, %c0_i32 : i32, i32
  }
  func.func @transform_1(%arg0: i32) -> (i32, i32) {
    %c0_i32 = arith.constant 0 : i32
    %c0_i32_0 = arith.constant 0 : i32
    %c0_i32_1 = arith.constant 0 : i32
    return %c0_i32, %c0_i32_0 : i32, i32
  }
  func.func @transform_2(%arg0: i32) -> (i32, i32) {
    %c0_i32 = arith.constant 0 : i32
    %c0_i32_0 = arith.constant 0 : i32
    return %arg0, %c0_i32 : i32, i32
  }
  func.func @transform_3(%arg0: i32) -> (i32, i32, i32) {
    %c0_i32 = arith.constant 0 : i32
    %c0_i32_0 = arith.constant 0 : i32
    %c0_i32_1 = arith.constant 0 : i32
    return %arg0, %c0_i32, %c0_i32_0 : i32, i32, i32
  }
}

</mosaic_0001>

<bundles_post_ra>
// kernel: tpu_custom_call.1
= control target key start
LH: loop header
LB: loop body
LE: loop exit
PB: predicated region body
PF: predicated region fallthrough
CT: control target
= control target key end

     0   :  { %9 = vsyncpa [#allocation3], 0  ;;  %s797_s0 = inlined_call_operand.vmem [shape: s32[16,2], index: 0, kind: input, shape index: {}]   ;;  %s798_s1 = inlined_call_operand.hbm [shape: f32[128,128], index: 1, kind: input, shape index: {}]   ;;  %s799_s2 = inlined_call_operand.hbm [shape: f32[16,128], index: 2, kind: output, shape index: {0}]   ;;  %s800_s3 = inlined_call_operand.vmem [shape: f32[2,1,1], index: 3, kind: output, shape index: {1}]  }
   0x1   :  { %10 = vsyncpa [#allocation4], 0 }
   0x2   :  { %12 = vsyncpa [#allocation4 + $0x1], 0  ;;  %s681_s12 = smov 0   ;;  %s683_s13 = smov 0  }
   0x3   :  { %s685_s14 = smov 0   ;;  %s687_s15 = smov 0  }
   0x4 LB: > { %s702_s16 = sadd.s32 4294967295, %s650_s15   ;;  %s428_s17 = sadd.s32 4294967294, %s650_s15   ;;  %s650_s15 = sphi %s687_s15, %s808_s15   ;;  %s646_s14 = sphi %s685_s14, %s807_s14   ;;  %s642_s13 = sphi %s683_s13, %s806_s13   ;;  %s638_s12 = sphi %s681_s12, %s805_s12  }
   0x5   : > { %s706_s18 = sadd.s32 1, %s650_s15   ;;  %s72_s19 = sadd.s32 1, %s646_s14 }
   0x6   : > { %s69_s20 = ssub.s32 %s650_s15, %s706_s18  ;;  %p82_p0 = scmp.ne.s32.totalorder %s646_s14, %s642_s13 }
   0x7   : > { %p70_p1 = scmp.eq.s32.totalorder %s69_s20, 0  ;;  %p83_p2 = scmp.eq.s32.totalorder %s702_s16, 1 }
   0x8   : > { %p88_p3 = scmp.ne.s32.totalorder %s642_s13, %s638_s12  ;;  %p89_p4 = scmp.eq.s32.totalorder %s428_s17, 1 }
   0x9   : > { %s717_s21 = scalar_select %p70_p1, %s646_s14, %s72_s19  }
   0xa   : > { %p719_p5 = por %p83_p2, %p82_p0  ;;  %p723_p6 = por %p89_p4, %p88_p3 }
   0xb   : > { %p429_p7 = scmp.ge.s32.totalorder %s650_s15, 1  ;;  %p122_p8 = scmp.lt.s32.totalorder %s650_s15, 3 }
   0xc   : > { %s802_s23 = scalar_select %p723_p6, 1, 0 }
   0xd   : > { %p510_p9 = scmp.eq.s32.totalorder %s702_s16, 0  ;;  %p730_p10 = pnand %p429_p7, %p122_p8 }
   0xe   : > { %s652_s25 = smov [#allocation2]  }
   0xf   : > { %s134_s26 = sshll.u32 %s652_s25, 4  ;;  %p502_p11 = pneg %p730_p10  ;;  %s135_s26 = int_to_ptr.vmem [resolvable:$true] %s134_s26 }
  0x10   : > { %s571_s27 = scalar_lea.vmem %s135_s26, 2048  ;;  %p579_p3 = scmp.lt.s32.totalorder %s135_s26, %s135_s26 }
  0x11   : > { %p503_p12 = pnand %p510_p9, %p502_p11  ;;  %p572_p0 = scmp.ne.s32.totalorder %s135_s26, %s571_s27 }
  0x12   : > { %p580_p4 = scmp.lt.s32.totalorder %s571_s27, %s571_s27 }
  0x13   : > { %p562_p13 = pneg %p503_p12 }
  0x14   : > { %p581_p6 = por %p580_p4, %p579_p3 }
  0x15   : > { %p574_p1 = pnand %p572_p0, %p562_p13 }
  0x17   : > { %p575_p2 = pneg %p574_p1 }
  0x19   : > { %p582_p7 = pnand %p581_p6, %p575_p2 }
  0x1b   : > { %585 = shalt.err (!%p582_p7)
}
  0x1c   : > { %s653_s28 = smov 128   ;;  %s654_s29 = smov 8  }
  0x1d   : > { %505 = dma.hbm_to_vmem [thread:$0]  (!%p503_p12), %s798_s1, 2048, %s135_s26, [#allocation3], %s653_s28, %s653_s28, %s654_s29  }
  0x1e   : > { %157 = sbr.rel (%p730_p10) target bundleno = 878 (0x36e), region = 28 }
  0x23   : > { %629 = dma.done.wait (%p510_p9), [#allocation3], 2048  }
  0x24   : > { %631 = vsyncadd (%p510_p9), [#allocation3], 4294965248  ;;  %p183_p8 = scmp.lt.s32.totalorder %s702_s16, 1  ;;  %v655_v0 = vmov 0   ;;  %v656_v1 = vmov 0.0   ;;  %vm657_vm0 = vmmov 0   ;;  %v207_v20 = vlaneseq }
  0x25   : > { %553 = vset.pattern.permute.xlu0 %v655_v0  ;;  %459 = vmatprep.subr.mxu0 %v656_v1  ;;  %v658_v2 = vmov 1   ;;  %v206_v4 = vld [vmem:[#allocation2 + $0x78] sm:$0xff]  ;;  %v205_v5 = vld [vmem:[#allocation2 + $0x70] sm:$0xff]  ;;  %v204_v6 = vld [vmem:[#allocation2 + $0x68] sm:$0xff]  ;;  %v659_v23 = vmov 1.0   ;;  %s175_s10 = sand.u32 1, %s642_s13  }
  0x26   : > { %s749_s5 = scalar_select %p183_p8, %s702_s16, 1  ;;  %491 = vmatprep.mubr.msk.f32.mxu0 %vm657_vm0, %v656_v1  ;;  %554 = vset.pattern.permute.xlu1 %v658_v2  ;;  %v203_v7 = vld [vmem:[#allocation2 + $0x60] sm:$0xff]  ;;  %v202_v8 = vld [vmem:[#allocation2 + $0x58] sm:$0xff]  ;;  %v201_v9 = vld [vmem:[#allocation2 + $0x50] sm:$0xff]  ;;  %v208_v21 = vand.u32 127, %v207_v20  ;;  %vm304_vm3 = vcmask 7168  }
  0x27   : > { %460 = vmatpush3.msra.mxu0 %v206_v4  ;;  %v200_v10 = vld [vmem:[#allocation2 + $0x48] sm:$0xff]  ;;  %v199_v11 = vld [vmem:[#allocation2 + $0x40] sm:$0xff]  ;;  %v198_v12 = vld [vmem:[#allocation2 + $0x38] sm:$0xff]  ;;  %s434_s11 = sshll.u32 %s175_s10, 3  ;;  %s439_s19 = sshll.u32 %s702_s16, 7 }
  0x28   : > { %s435_s6 = sshll.u32 %s749_s5, 3  ;;  %461 = vmatprep.subr.mxu0 %v656_v1  ;;  %v197_v13 = vld [vmem:[#allocation2 + $0x30] sm:$0xff]  ;;  %v196_v14 = vld [vmem:[#allocation2 + $0x28] sm:$0xff]  ;;  %v195_v15 = vld [vmem:[#allocation2 + $0x20] sm:$0xff]  ;;  %s177_s17 = scalar_lea.vmem [#allocation5], %s434_s11 }
  0x29   : > { %s186_s9 = scalar_lea.vmem %s797_s0, %s435_s6  ;;  %462 = vmatpush3.msra.mxu0 %v205_v5  ;;  %v194_v16 = vld [vmem:[#allocation2 + $0x18] sm:$0xff]  ;;  %v193_v17 = vld [vmem:[#allocation2 + $0x10] sm:$0xff]  ;;  %v192_v18 = vld [vmem:[#allocation2 + $0x8] sm:$0xff]  ;;  %s335_s20 = sshll.u32 %s177_s17, 4  ;;  %s336_s20 = int_to_ptr.vmem [resolvable:$true] %s335_s20 }
  0x2a   : > { %v190_v3 = vld [vmem:[%s186_s9] sm:$0xff]  ;;  %463 = vmatprep.subr.mxu0 %v656_v1  ;;  %s333_s26 = scalar_lea.hbm %s799_s2, %s439_s19  ;;  %s319_s27 = scalar_lea.sflag [#allocation4], %s175_s10 }
  0x2b   : > { %210 = vperm.xlu0 %553, %v190_v3   ;;  %297 = vperm.xlu1 %554, %v190_v3   ;;  %v191_v19 = vld [vmem:[#allocation2] sm:$0xff]  ;;  %s586_s28 = scalar_lea.vmem %s336_s20, 128  ;;  %s660_s29 = smov [#allocation5]  }
  0x2c   : > { %464 = vmatpush3.msra.mxu0 %v204_v6  ;;  %p587_p6 = scmp.ne.s32.totalorder %s336_s20, %s586_s28  ;;  %s590_s30 = sshll.u32 %s660_s29, 4  ;;  %s591_s30 = int_to_ptr.vmem [resolvable:$false] %s590_s30 }
  0x2d   : > { %465 = vmatprep.subr.mxu0 %v656_v1  ;;  %s592_s4 = scalar_lea.vmem %s591_s30, 256  ;;  %p593_p11 = scmp.lt.s32.totalorder %s336_s20, %s591_s30 }
  0x2e   : > { %466 = vmatpush3.msra.mxu0 %v203_v7  ;;  %p588_p9 = pnand %p587_p6, %p719_p5  ;;  %p594_p12 = scmp.lt.s32.totalorder %s592_s4, %s586_s28 }
  0x2f   : > { %555 = vset.pattern.permute.xlu0 %v658_v2  ;;  %467 = vmatprep.subr.mxu0 %v656_v1 }
  0x30   : > { %468 = vmatpush3.msra.mxu0 %v202_v8  ;;  %p589_p10 = pneg %p588_p9  ;;  %p595_p13 = por %p594_p12, %p593_p11 }
  0x31   : > { %469 = vmatprep.subr.mxu0 %v656_v1 }
  0x32   : > { %470 = vmatpush3.msra.mxu0 %v201_v9  ;;  %p596_p0 = pnand %p595_p13, %p589_p10 }
  0x33   : > { %471 = vmatprep.subr.mxu0 %v656_v1 }
  0x34   : > { %472 = vmatpush3.msra.mxu0 %v200_v10 }
  0x35   : > { %473 = vmatprep.subr.mxu0 %v656_v1 }
  0x36   : > { %474 = vmatpush3.msra.mxu0 %v199_v11 }
  0x37   : > { %475 = vmatprep.subr.mxu0 %v656_v1 }
  0x38   : > { %476 = vmatpush3.msra.mxu0 %v198_v12 }
  0x39   : > { %477 = vmatprep.subr.mxu0 %v656_v1 }
  0x3a   : > { %478 = vmatpush3.msra.mxu0 %v197_v13 }
  0x3b   : > { %479 = vmatprep.subr.mxu0 %v656_v1 }
  0x3c   : > { %480 = vmatpush3.msra.mxu0 %v196_v14 }
  0x3d   : > { %481 = vmatprep.subr.mxu0 %v656_v1 }
  0x3e   : > { %482 = vmatpush3.msra.mxu0 %v195_v15 }
  0x3f   : > { %483 = vmatprep.subr.mxu0 %v656_v1 }
  0x40   : > { %484 = vmatpush3.msra.mxu0 %v194_v16 }
  0x41   : > { %485 = vmatprep.subr.mxu0 %v656_v1 }
  0x42   : > { %486 = vmatpush3.msra.mxu0 %v193_v17 }
  0x43   : > { %487 = vmatprep.subr.mxu0 %v656_v1 }
  0x44   : > { %488 = vmatpush3.msra.mxu0 %v192_v18 }
  0x45   : > { %489 = vmatprep.subr.mxu0 %v656_v1 }
  0x46   : > { %490 = vmatpush3.msra.mxu0 %v191_v19 }
  0xa6   : > { %v211_v22 = vpop.permute.xlu0 %210  ;;  %v298_v24 = vpop.permute.xlu1 %297 }
  0xa7   : > { %vm212_vm1 = vcmp.eq.s32.totalorder %v208_v21, %v211_v22  ;;  %vm299_vm2 = vcmp.eq.s32.totalorder %v208_v21, %v298_v24 }
  0xa8   : > { %492 = vmatmul.mubr.msk.f32.vlgmr.msra.gmra.mxu0 %vm212_vm1, %v659_v23 }
 0x168   : > { %v281_v25 = vpop.f32.mrf.mxu0 }
 0x169   : > { %286 = vmax.xlane.f32.xlu0 %v281_v25  ;;  %285 = vst [vmem:[%s177_s17] sm:$0xff] %v281_v25  ;;  %v300_v27 = vsel %vm299_vm2, %v281_v25, 0.0 }
 0x16a   : > { %v493_v26 = vpop.f32.mrf.mxu0 }
 0x16d   : > { %301 = vadd.xlane.f32.xlu0 %v300_v27 }
 0x1f2   : > { %v287_v28 = vpop.xlane.xlu0 %286 }
 0x1f3   : > { %v288_v29 = vsub.f32 %v281_v25, %v287_v28 }
 0x1f5   : > { %v289_v30 = vmul.f32 1.442695, %v288_v29 }
 0x1f6   : > { %v302_v36 = vpop.xlane.xlu0 %301 }
 0x1f7   : > { %556 = vpow2.f32 %v289_v30 }
 0x204   : > { %v557_v31 = vpop.eup %556 }
 0x205   : > { %291 = vadd.xlane.f32.xlu1 %v557_v31 }
 0x28e   : > { %v292_v32 = vpop.xlane.xlu1 %291 }
 0x28f   : > { %558 = vlog2.f32 %v292_v32 }
 0x29c   : > { %v559_v33 = vpop.eup %558 }
 0x29d   : > { %v294_v34 = vmul.f32 0.6931472, %v559_v33 }
 0x29f   : > { %v295_v35 = vadd.f32 %v294_v34, %v287_v28 }
 0x2a1   : > { %v303_v37 = vsub.f32 %v295_v35, %v302_v36 }
 0x2a3   : > { %v305_v38 = vsel %vm304_vm3, %v303_v37, 0.0 }
 0x2a4   : > { %306 = vadd.xlane.f32.xlu0 %v305_v38 }
 0x2a5   : > { %599 = shalt.err (!%p596_p0)
}
 0x2a6   : > { %s600_s16 = scalar_lea.hbm %s333_s26, 128  ;;  %s604_s8 = scalar_lea.hbm %s799_s2, 256 }
 0x2a7   : > { %p601_p1 = scmp.ne.s32.totalorder %s333_s26, %s600_s16  ;;  %p605_p4 = scmp.lt.s32.totalorder %s333_s26, %s799_s2 }
 0x2a8   : > { %p606_p7 = scmp.lt.s32.totalorder %s604_s8, %s600_s16 }
 0x2a9   : > { %p602_p2 = pnand %p601_p1, %p719_p5 }
 0x2aa   : > { %p607_p8 = por %p606_p7, %p605_p4 }
 0x2ab   : > { %p603_p3 = pneg %p602_p2 }
 0x2ad   : > { %p608_p6 = pnand %p607_p8, %p603_p3 }
 0x2af   : > { %611 = shalt.err (!%p608_p6)
}
 0x2b0   : > { %500 = dma.vmem_to_hbm [thread:$0]  (%p719_p5), %s336_s20, 128, %s333_s26, %s319_s27   ;;  %vm316_vm4 = vcmask 0  }
 0x2b1   : > { %s189_s19 = scalar_lea.vmem %s800_s3, %s749_s5 }
 0x32d   : > { %v307_v39 = vpop.xlane.xlu0 %306 }
 0x32e   : > { %v308_v40 = vrot.slane %v307_v39, 4 }
 0x330   : > { %v309_v41 = vadd.f32 %v308_v40, %v307_v39 }
 0x332   : > { %v310_v42 = vrot.slane %v309_v41, 2 }
 0x334   : > { %v311_v43 = vadd.f32 %v310_v42, %v309_v41 }
 0x336   : > { %v312_v44 = vrot.slane %v311_v43, 1 }
 0x338   : > { %v313_v45 = vadd.f32 %v312_v44, %v311_v43 }
 0x33a   : > { %494 = vpush %v313_v45 }
 0x36b   : > { %s495_s24 = spop %494 }
 0x36c   : > { %v315_v46 = vstv %s495_s24 }
 0x36d   : > { %317 = vst.msk [vmem:[%s189_s19] sm:$0x1] %vm316_vm4, %v315_v46 }
 0x36e PF: > { %p512_p5 = scmp.ge.s32.totalorder %s650_s15, 2  ;;  %s350_s22 = sand.u32 1, %s638_s12  }
 0x36f   : > { %p804_p9 = scmp.ne.s32.totalorder %s802_s23, 0  ;;  %s351_s20 = scalar_lea.sflag [#allocation4], %s350_s22 }
 0x371   : > { %p507_p10 = pnand %p512_p5, %p804_p9 }
 0x373   : > { %p508_p11 = pneg %p507_p10 }
 0x375   : > { %633 = dma.done.wait (%p508_p11), %s351_s20, 128  }
 0x376   : > { %635 = vsyncadd (%p508_p11), %s351_s20, 4294967168  ;;  %p15_p12 = scmp.ge.s32.totalorder %s706_s18, 4   ;;  %s805_s12 = smov %s642_s13 }
 0x377   : > { %s806_s13 = smov %s646_s14  ;;  %s807_s14 = smov %s717_s21 }
 0x378   : > { %s808_s15 = smov %s706_s18  ;;  %17 = sbr.rel (!%p15_p12) target bundleno = 4 (0x4), region = 80 }
 0x37d   :  { %362 = vsyncpa [#allocation3], 1 }
 0x37e   :  { %364 = vsyncpa [#allocation3 + $0x1], 1 }
 0x37f   :  { %365 = vsyncpa [#allocation4], 1 }
 0x380   :  { %367 = vsyncpa [#allocation4 + $0x1], 1 }

</bundles_post_ra>
